<compile_context>
chip_gen: v7x
topology: tpu7x:2x2x1
jax: 0.10.0
libtpu: 0.0.40
codegen_flags: <defaults>
</compile_context>

<pallas_src>
import functools

import jax
import jax.numpy as jnp
import numpy as np
from jax.experimental import pallas as pl
from jax.experimental.pallas import tpu as pltpu


def _attention_kernel(temp_ref, x_ref, wqkv_ref, wo_ref, o_ref, *, B, F, D):
    # x_ref: (B*F, D); wqkv_ref: (D, 3D) = [wq^T | wk^T | wv^T]; wo_ref: (D, D) = wo^T.
    # Fused Q/K/V projection: one canonical (B*F, D) @ (D, 3D) MXU matmul.
    qkv = jnp.dot(x_ref[...], wqkv_ref[...], preferred_element_type=jnp.float32)

    wo_t = wo_ref[...]          # hoisted: loaded once, reused by every batch
    eps2 = 1e-24                # (1e-12)^2: rsqrt(max(ss, eps^2)) == 1 / max(||.||, eps)

    for b in range(B):          # tiny static B -> unrolled at trace time
        r0 = b * F
        qb = qkv[r0:r0 + F, 0 * D:1 * D]      # (F, D)
        kb = qkv[r0:r0 + F, 1 * D:2 * D]      # (F, D)
        vb = qkv[r0:r0 + F, 2 * D:3 * D]      # (F, D)

        # After the 'b feature seq -> b seq feature' transpose, F.normalize(dim=-1)
        # normalizes over F, i.e. over the rows (axis 0) of these (F, D) tiles.
        # Single fused cross-sublane reduction covering both q and k, then slice.
        qk = qkv[r0:r0 + F, 0:2 * D]                              # (F, 2D)
        ss = jnp.sum(qk * qk, axis=0, keepdims=True)              # (1, 2D), one XLU reduce
        inv = jax.lax.rsqrt(jnp.maximum(ss, eps2))                # EUP rsqrt
        # Temperature folds into the q scale (it cannot be folded into the weights:
        # q is unit-normalized afterwards, so weight scaling would cancel).
        qn = qb * (temp_ref[b] * inv[:, 0:D])                     # (F, D)
        kn = kb * inv[:, D:2 * D]                                 # (F, D)

        # attn = qn^T @ kn (contract over F). Explicit (F,D)->(D,F) transpose keeps
        # the dot canonical, so no hidden relayout lands on the MXU push path.
        attn = jnp.dot(qn.T, kn, preferred_element_type=jnp.float32)   # (D, D)

        # Row softmax over the key axis; exact divide (approx vrcp removed).
        attn = attn - jnp.max(attn, axis=-1, keepdims=True)
        p = jnp.exp(attn)
        p = p / jnp.sum(p, axis=-1, keepdims=True)

        # out[f, i] = sum_j v[f, j] * p[i, j] == v @ p^T, again via an explicit
        # transpose so the contraction is canonical.
        out = jnp.dot(vb, p.T, preferred_element_type=jnp.float32)     # (F, D)

        # Per-batch project_out (no bias) + direct store: no concatenate on the
        # critical path, and the store can overlap the next batch's compute.
        y = jnp.dot(out, wo_t, preferred_element_type=jnp.float32)     # (F, D)
        o_ref[r0:r0 + F, :] = y.astype(o_ref.dtype)


def attention_pallas(x, temperature, wq, wk, wv, wo):
    B, F, D = x.shape
    # Free layout plumbing in the wrapper: flatten batch into rows, fuse and
    # pre-transpose the weights so the kernel never relayouts them.
    x2 = x.reshape(B * F, D)
    wqkv_t = jnp.concatenate([wq.T, wk.T, wv.T], axis=1)   # (D, 3D)
    wo_t = wo.T                                            # (D, D)
    temp = jnp.broadcast_to(jnp.reshape(temperature, (-1,)), (B,)).astype(jnp.float32)

    kernel = functools.partial(_attention_kernel, B=B, F=F, D=D)
    out = pl.pallas_call(
        kernel,
        out_shape=jax.ShapeDtypeStruct((B * F, D), x.dtype),
        in_specs=[
            pl.BlockSpec(memory_space=pltpu.MemorySpace.SMEM),   # temperature (B,)
            pl.BlockSpec(memory_space=pltpu.MemorySpace.VMEM),   # x2 (B*F, D)
            pl.BlockSpec(memory_space=pltpu.MemorySpace.VMEM),   # wqkv_t (D, 3D)
            pl.BlockSpec(memory_space=pltpu.MemorySpace.VMEM),   # wo_t (D, D)
        ],
        out_specs=pl.BlockSpec(memory_space=pltpu.MemorySpace.VMEM),
    )(temp, x2, wqkv_t, wo_t)
    return out.reshape(B, F, D)


def attention_ref(x, temperature, wq, wk, wv, wo):
    """Pure-JAX reference mirroring the PyTorch forward exactly (full-f32 matmuls)."""
    hi = jax.lax.Precision.HIGHEST
    q = jnp.einsum('bfd,ed->bfe', x, wq, precision=hi)
    k = jnp.einsum('bfd,ed->bfe', x, wk, precision=hi)
    v = jnp.einsum('bfd,ed->bfe', x, wv, precision=hi)
    qt = jnp.swapaxes(q, -1, -2)   # (B, D, F)
    kt = jnp.swapaxes(k, -1, -2)
    vt = jnp.swapaxes(v, -1, -2)
    qt = qt / jnp.maximum(jnp.linalg.norm(qt, axis=-1, keepdims=True), 1e-12)
    kt = kt / jnp.maximum(jnp.linalg.norm(kt, axis=-1, keepdims=True), 1e-12)
    attn = jnp.einsum('bdf,bef->bde', qt, kt, precision=hi) * temperature[:, None, None]
    attn = jax.nn.softmax(attn, axis=-1)
    out = jnp.einsum('bde,bef->bdf', attn, vt, precision=hi)
    out = jnp.swapaxes(out, -1, -2)            # (B, F, D)
    return jnp.einsum('bfd,ed->bfe', out, wo, precision=hi)


if __name__ == "__main__":
    B = 2          # batch; num_heads must equal B (or 1) for the temperature broadcast
    F = 16         # 'feature' axis length
    D = 32         # dim (the nn.Linear axis)

    key = jax.random.PRNGKey(0)
    kx, kq, kk, kv, ko = jax.random.split(key, 5)
    x = jax.random.normal(kx, (B, F, D), dtype=jnp.float32)
    scale = 1.0 / np.sqrt(D)
    wq = jax.random.normal(kq, (D, D), dtype=jnp.float32) * scale
    wk = jax.random.normal(kk, (D, D), dtype=jnp.float32) * scale
    wv = jax.random.normal(kv, (D, D), dtype=jnp.float32) * scale
    wo = jax.random.normal(ko, (D, D), dtype=jnp.float32) * scale
    # nn.Parameter(torch.ones(num_heads, 1, 1)) -> deterministic ones, flattened
    temperature = jnp.ones((B,), dtype=jnp.float32)

    out = attention_pallas(x, temperature, wq, wk, wv, wo)
    out = jax.block_until_ready(out)

    ref = attention_ref(x, temperature, wq, wk, wv, wo)
    # The softmax/normalization path is now exact (no approx reciprocal); the
    # remaining tolerance is only headroom for possible MXU f32 emulation
    # pass-count differences between the Mosaic dot lowering and the XLA
    # (HIGHEST-precision) reference matmuls.
    np.testing.assert_allclose(np.asarray(out), np.asarray(ref), rtol=5e-3, atol=5e-3)
    print("KERNEL_OK")
</pallas_src>

<mosaic_0001>
module attributes {stable_mosaic.version = 11 : i64} {
  func.func @_attention_kernel(%arg0: memref<2xf32, #tpu.memory_space<smem>>, %arg1: memref<32x32xf32, #tpu.memory_space<vmem>>, %arg2: memref<32x96xf32, #tpu.memory_space<vmem>>, %arg3: memref<32x32xf32, #tpu.memory_space<vmem>>, %arg4: memref<32x32xf32, #tpu.memory_space<vmem>>) attributes {dimension_semantics = [], scalar_prefetch = 0 : i64, scratch_operands = 0 : i64, tpu.core_type = #tpu.core_type<tc>} {
    %c0 = arith.constant 0 : index
    %c0_0 = arith.constant 0 : index
    %0 = vector.load %arg1[%c0, %c0_0] : memref<32x32xf32, #tpu.memory_space<vmem>>, vector<32x32xf32>
    %c0_1 = arith.constant 0 : index
    %c0_2 = arith.constant 0 : index
    %1 = vector.load %arg2[%c0_1, %c0_2] : memref<32x96xf32, #tpu.memory_space<vmem>>, vector<32x96xf32>
    %cst = arith.constant dense<0.000000e+00> : vector<32x96xf32>
    %2 = tpu.matmul %0, %1, %cst {dimension_numbers = #tpu.dot_dimension_numbers<[1], [0], [0], [1], [0, 0, 1, 1], [], []>} : vector<32x32xf32>, vector<32x96xf32>, vector<32x96xf32> -> vector<32x96xf32>
    %c0_3 = arith.constant 0 : index
    %c0_4 = arith.constant 0 : index
    %3 = vector.load %arg3[%c0_3, %c0_4] : memref<32x32xf32, #tpu.memory_space<vmem>>, vector<32x32xf32>
    %4 = vector.extract_strided_slice %2 {offsets = [0, 0], sizes = [16, 32], strides = [1, 1]} : vector<32x96xf32> to vector<16x32xf32>
    %5 = vector.extract_strided_slice %2 {offsets = [0, 32], sizes = [16, 32], strides = [1, 1]} : vector<32x96xf32> to vector<16x32xf32>
    %6 = vector.extract_strided_slice %2 {offsets = [0, 64], sizes = [16, 32], strides = [1, 1]} : vector<32x96xf32> to vector<16x32xf32>
    %7 = vector.extract_strided_slice %2 {offsets = [0, 0], sizes = [16, 64], strides = [1, 1]} : vector<32x96xf32> to vector<16x64xf32>
    %8 = arith.mulf %7, %7 : vector<16x64xf32>
    %cst_5 = arith.constant dense<0.000000e+00> : vector<64xf32>
    %9 = vector.multi_reduction <add>, %8, %cst_5 [0] : vector<16x64xf32> to vector<64xf32>
    %10 = vector.shape_cast %9 : vector<64xf32> to vector<1x64xf32>
    %cst_6 = arith.constant 1.000000e-24 : f32
    %11 = vector.broadcast %cst_6 : f32 to vector<1x64xf32>
    %12 = arith.maximumf %10, %11 : vector<1x64xf32>
    %13 = math.rsqrt %12 : vector<1x64xf32>
    %c0_7 = arith.constant 0 : index
    %14 = memref.load %arg0[%c0_7] : memref<2xf32, #tpu.memory_space<smem>>
    %15 = vector.extract_strided_slice %13 {offsets = [0, 0], sizes = [1, 32], strides = [1, 1]} : vector<1x64xf32> to vector<1x32xf32>
    %16 = vector.broadcast %14 : f32 to vector<1x32xf32>
    %17 = arith.mulf %16, %15 : vector<1x32xf32>
    %18 = vector.broadcast %17 : vector<1x32xf32> to vector<16x32xf32>
    %19 = arith.mulf %4, %18 : vector<16x32xf32>
    %20 = vector.extract_strided_slice %13 {offsets = [0, 32], sizes = [1, 32], strides = [1, 1]} : vector<1x64xf32> to vector<1x32xf32>
    %21 = vector.broadcast %20 : vector<1x32xf32> to vector<16x32xf32>
    %22 = arith.mulf %5, %21 : vector<16x32xf32>
    %23 = tpu.transpose %19, [1, 0] : vector<16x32xf32> -> vector<32x16xf32>
    %cst_8 = arith.constant dense<0.000000e+00> : vector<32x32xf32>
    %24 = tpu.matmul %23, %22, %cst_8 {dimension_numbers = #tpu.dot_dimension_numbers<[1], [0], [0], [1], [0, 0, 1, 1], [], []>} : vector<32x16xf32>, vector<16x32xf32>, vector<32x32xf32> -> vector<32x32xf32>
    %cst_9 = arith.constant dense<0xFF800000> : vector<32xf32>
    %25 = vector.multi_reduction <maximumf>, %24, %cst_9 [1] : vector<32x32xf32> to vector<32xf32>
    %26 = vector.shape_cast %25 : vector<32xf32> to vector<32x1xf32>
    %27 = vector.broadcast %26 : vector<32x1xf32> to vector<32x32xf32>
    %28 = arith.subf %24, %27 : vector<32x32xf32>
    %29 = math.exp %28 : vector<32x32xf32>
    %cst_10 = arith.constant dense<0.000000e+00> : vector<32xf32>
    %30 = vector.multi_reduction <add>, %29, %cst_10 [1] : vector<32x32xf32> to vector<32xf32>
    %31 = vector.shape_cast %30 : vector<32xf32> to vector<32x1xf32>
    %32 = vector.broadcast %31 : vector<32x1xf32> to vector<32x32xf32>
    %33 = arith.divf %29, %32 : vector<32x32xf32>
    %34 = tpu.transpose %33, [1, 0] : vector<32x32xf32> -> vector<32x32xf32>
    %cst_11 = arith.constant dense<0.000000e+00> : vector<16x32xf32>
    %35 = tpu.matmul %6, %34, %cst_11 {dimension_numbers = #tpu.dot_dimension_numbers<[1], [0], [0], [1], [0, 0, 1, 1], [], []>} : vector<16x32xf32>, vector<32x32xf32>, vector<16x32xf32> -> vector<16x32xf32>
    %cst_12 = arith.constant dense<0.000000e+00> : vector<16x32xf32>
    %36 = tpu.matmul %35, %3, %cst_12 {dimension_numbers = #tpu.dot_dimension_numbers<[1], [0], [0], [1], [0, 0, 1, 1], [], []>} : vector<16x32xf32>, vector<32x32xf32>, vector<16x32xf32> -> vector<16x32xf32>
    %c0_13 = arith.constant 0 : index
    %c0_14 = arith.constant 0 : index
    %37 = vector.load %arg4[%c0_13, %c0_14] : memref<32x32xf32, #tpu.memory_space<vmem>>, vector<16x32xf32>
    tpu.vector_store %arg4[%c0_13, %c0_14], %36 {strides = array<i32>} : memref<32x32xf32, #tpu.memory_space<vmem>>, vector<16x32xf32>,
    %38 = vector.extract_strided_slice %2 {offsets = [16, 0], sizes = [16, 32], strides = [1, 1]} : vector<32x96xf32> to vector<16x32xf32>
    %39 = vector.extract_strided_slice %2 {offsets = [16, 32], sizes = [16, 32], strides = [1, 1]} : vector<32x96xf32> to vector<16x32xf32>
    %40 = vector.extract_strided_slice %2 {offsets = [16, 64], sizes = [16, 32], strides = [1, 1]} : vector<32x96xf32> to vector<16x32xf32>
    %41 = vector.extract_strided_slice %2 {offsets = [16, 0], sizes = [16, 64], strides = [1, 1]} : vector<32x96xf32> to vector<16x64xf32>
    %42 = arith.mulf %41, %41 : vector<16x64xf32>
    %cst_15 = arith.constant dense<0.000000e+00> : vector<64xf32>
    %43 = vector.multi_reduction <add>, %42, %cst_15 [0] : vector<16x64xf32> to vector<64xf32>
    %44 = vector.shape_cast %43 : vector<64xf32> to vector<1x64xf32>
    %cst_16 = arith.constant 1.000000e-24 : f32
    %45 = vector.broadcast %cst_16 : f32 to vector<1x64xf32>
    %46 = arith.maximumf %44, %45 : vector<1x64xf32>
    %47 = math.rsqrt %46 : vector<1x64xf32>
    %c1 = arith.constant 1 : index
    %48 = memref.load %arg0[%c1] : memref<2xf32, #tpu.memory_space<smem>>
    %49 = vector.extract_strided_slice %47 {offsets = [0, 0], sizes = [1, 32], strides = [1, 1]} : vector<1x64xf32> to vector<1x32xf32>
    %50 = vector.broadcast %48 : f32 to vector<1x32xf32>
    %51 = arith.mulf %50, %49 : vector<1x32xf32>
    %52 = vector.broadcast %51 : vector<1x32xf32> to vector<16x32xf32>
    %53 = arith.mulf %38, %52 : vector<16x32xf32>
    %54 = vector.extract_strided_slice %47 {offsets = [0, 32], sizes = [1, 32], strides = [1, 1]} : vector<1x64xf32> to vector<1x32xf32>
    %55 = vector.broadcast %54 : vector<1x32xf32> to vector<16x32xf32>
    %56 = arith.mulf %39, %55 : vector<16x32xf32>
    %57 = tpu.transpose %53, [1, 0] : vector<16x32xf32> -> vector<32x16xf32>
    %cst_17 = arith.constant dense<0.000000e+00> : vector<32x32xf32>
    %58 = tpu.matmul %57, %56, %cst_17 {dimension_numbers = #tpu.dot_dimension_numbers<[1], [0], [0], [1], [0, 0, 1, 1], [], []>} : vector<32x16xf32>, vector<16x32xf32>, vector<32x32xf32> -> vector<32x32xf32>
    %cst_18 = arith.constant dense<0xFF800000> : vector<32xf32>
    %59 = vector.multi_reduction <maximumf>, %58, %cst_18 [1] : vector<32x32xf32> to vector<32xf32>
    %60 = vector.shape_cast %59 : vector<32xf32> to vector<32x1xf32>
    %61 = vector.broadcast %60 : vector<32x1xf32> to vector<32x32xf32>
    %62 = arith.subf %58, %61 : vector<32x32xf32>
    %63 = math.exp %62 : vector<32x32xf32>
    %cst_19 = arith.constant dense<0.000000e+00> : vector<32xf32>
    %64 = vector.multi_reduction <add>, %63, %cst_19 [1] : vector<32x32xf32> to vector<32xf32>
    %65 = vector.shape_cast %64 : vector<32xf32> to vector<32x1xf32>
    %66 = vector.broadcast %65 : vector<32x1xf32> to vector<32x32xf32>
    %67 = arith.divf %63, %66 : vector<32x32xf32>
    %68 = tpu.transpose %67, [1, 0] : vector<32x32xf32> -> vector<32x32xf32>
    %cst_20 = arith.constant dense<0.000000e+00> : vector<16x32xf32>
    %69 = tpu.matmul %40, %68, %cst_20 {dimension_numbers = #tpu.dot_dimension_numbers<[1], [0], [0], [1], [0, 0, 1, 1], [], []>} : vector<16x32xf32>, vector<32x32xf32>, vector<16x32xf32> -> vector<16x32xf32>
    %cst_21 = arith.constant dense<0.000000e+00> : vector<16x32xf32>
    %70 = tpu.matmul %69, %3, %cst_21 {dimension_numbers = #tpu.dot_dimension_numbers<[1], [0], [0], [1], [0, 0, 1, 1], [], []>} : vector<16x32xf32>, vector<32x32xf32>, vector<16x32xf32> -> vector<16x32xf32>
    %c16 = arith.constant 16 : index
    %c0_22 = arith.constant 0 : index
    %71 = vector.load %arg4[%c16, %c0_22] : memref<32x32xf32, #tpu.memory_space<vmem>>, vector<16x32xf32>
    tpu.vector_store %arg4[%c16, %c0_22], %70 {strides = array<i32>} : memref<32x32xf32, #tpu.memory_space<vmem>>, vector<16x32xf32>,
    return
  }
}

</mosaic_0001>

<bundles_post_ra>
// kernel: tpu_custom_call.1
= control target key start
LH: loop header
LB: loop body
LE: loop exit
PB: predicated region body
PF: predicated region fallthrough
CT: control target
= control target key end

     0   :  { %9 = vsyncpa [#allocation5], 0  ;;  %s1531_s0 = inlined_call_operand.hbm [shape: f32[2], index: 0, kind: input, shape index: {}]   ;;  %s1532_s1 = inlined_call_operand.hbm [shape: f32[32,32], index: 1, kind: input, shape index: {}]   ;;  %s1533_s2 = inlined_call_operand.hbm [shape: f32[32,96], index: 2, kind: input, shape index: {}]   ;;  %s1534_s3 = inlined_call_operand.hbm [shape: f32[32,32], index: 3, kind: input, shape index: {}]   ;;  %s1535_s4 = inlined_call_operand.hbm [shape: f32[32,32], index: 4, kind: output, shape index: {}]  }
   0x1   :  { %10 = vsyncpa [#allocation3], 0 }
   0x2   :  { %11 = vsyncpa [#allocation8], 0 }
   0x3   :  { %12 = vsyncpa [#allocation4], 0  ;;  %s1332_s15 = smov [#allocation7]   ;;  %s1333_s17 = smov [#allocation6]  }
   0x4   :  { %s38_s16 = sshll.u32 %s1332_s15, 4  ;;  %s26_s18 = sshll.u32 %s1333_s17, 4  ;;  %s39_s16 = int_to_ptr.vmem [resolvable:$true] %s38_s16  ;;  %s27_s18 = int_to_ptr.vmem [resolvable:$true] %s26_s18 }
   0x5   :  { %s1226_s21 = scalar_lea.hbm %s1533_s2, 512 }
   0x6   :  { %p1227_p0 = scmp.ne.s32.totalorder %s1533_s2, %s1226_s21  ;;  %p1230_p1 = scmp.lt.u32.totalorder %s1226_s21, %s1533_s2 }
   0x8   :  { %p1232_p2 = pnand %p1230_p1, %p1227_p0 }
   0xa   :  { %1235 = shalt.err (!%p1232_p2)
}
   0xb   :  { %s1236_s26 = scalar_lea.vmem %s39_s16, 512  ;;  %p1241_p4 = scmp.lt.s32.totalorder %s39_s16, %s39_s16 }
   0xc   :  { %p1237_p3 = scmp.ne.s32.totalorder %s39_s16, %s1236_s26  ;;  %p1242_p5 = scmp.lt.s32.totalorder %s1236_s26, %s1236_s26 }
   0xe   :  { %p1243_p6 = por %p1242_p5, %p1241_p4 }
  0x10   :  { %p1244_p7 = pnand %p1243_p6, %p1237_p3 }
  0x12   :  { %1247 = shalt.err (!%p1244_p7)
}
  0x13   :  { %s1334_s27 = smov 128   ;;  %s1335_s28 = smov 8  }
  0x14   :  { %44 = dma.hbm_to_vmem [thread:$0]  %s1533_s2, 512, %s39_s16, [#allocation8], %s1334_s27, %s1334_s27, %s1335_s28  }
  0x15   :  { %s1248_s7 = scalar_lea.hbm %s1531_s0, 16 }
  0x16   :  { %p1249_p8 = scmp.ne.s32.totalorder %s1531_s0, %s1248_s7  ;;  %p1252_p9 = scmp.lt.u32.totalorder %s1248_s7, %s1531_s0 }
  0x18   :  { %p1254_p10 = pnand %p1252_p9, %p1249_p8 }
  0x1a   :  { %1257 = shalt.err (!%p1254_p10)
}
  0x1b   :  { %s1336_s12 = smov [#allocation2]   ;;  %s1258_s16 = scalar_lea.hbm %s1532_s1, 512 }
  0x1c   :  { %20 = dma.hbm_to_smem %s1531_s0, 16, %s1336_s12, [#allocation5]  }
  0x1d   :  { %p1259_p11 = scmp.ne.s32.totalorder %s1532_s1, %s1258_s16  ;;  %p1262_p12 = scmp.lt.u32.totalorder %s1258_s16, %s1532_s1 }
  0x1f   :  { %p1264_p13 = pnand %p1262_p12, %p1259_p11 }
  0x21   :  { %1267 = shalt.err (!%p1264_p13)
}
  0x22   :  { %s1268_s22 = scalar_lea.vmem %s27_s18, 512  ;;  %p1273_p1 = scmp.lt.s32.totalorder %s27_s18, %s27_s18 }
  0x23   :  { %p1269_p0 = scmp.ne.s32.totalorder %s27_s18, %s1268_s22  ;;  %p1274_p2 = scmp.lt.s32.totalorder %s1268_s22, %s1268_s22 }
  0x25   :  { %p1275_p3 = por %p1274_p2, %p1273_p1 }
  0x27   :  { %p1276_p4 = pnand %p1275_p3, %p1269_p0 }
  0x29   :  { %1279 = shalt.err (!%p1276_p4)
}
  0x2a   :  { %32 = dma.hbm_to_vmem [thread:$0]  %s1532_s1, 512, %s27_s18, [#allocation3], %s1334_s27, %s1334_s27, %s1335_s28  }
  0x2b   :  { %s1337_s24 = smov [#allocation9]   ;;  %s1280_s30 = scalar_lea.hbm %s1534_s3, 512 }
  0x2c   :  { %s50_s25 = sshll.u32 %s1337_s24, 4  ;;  %p1281_p5 = scmp.ne.s32.totalorder %s1534_s3, %s1280_s30  ;;  %s51_s25 = int_to_ptr.vmem [resolvable:$true] %s50_s25 }
  0x2d   :  { %p1284_p6 = scmp.lt.u32.totalorder %s1280_s30, %s1534_s3 }
  0x2f   :  { %p1286_p7 = pnand %p1284_p6, %p1281_p5 }
  0x31   :  { %1289 = shalt.err (!%p1286_p7)
}
  0x32   :  { %s1290_s9 = scalar_lea.vmem %s51_s25, 512  ;;  %p1295_p9 = scmp.lt.s32.totalorder %s51_s25, %s51_s25 }
  0x33   :  { %p1291_p8 = scmp.ne.s32.totalorder %s51_s25, %s1290_s9  ;;  %p1296_p10 = scmp.lt.s32.totalorder %s1290_s9, %s1290_s9 }
  0x35   :  { %p1297_p11 = por %p1296_p10, %p1295_p9 }
  0x37   :  { %p1298_p12 = pnand %p1297_p11, %p1291_p8 }
  0x39   :  { %1301 = shalt.err (!%p1298_p12)
}
  0x3a   :  { %56 = dma.hbm_to_vmem [thread:$0]  %s1534_s3, 512, %s51_s25, [#allocation8], %s1334_s27, %s1334_s27, %s1335_s28  }
  0x3b   :  { %1324 = dma.done.wait [#allocation5], 16  }
  0x3c   :  { %1325 = vsyncadd [#allocation5], 4294967280 }
  0x3d   :  { %1326 = dma.done.wait [#allocation3], 512  }
  0x3e   :  { %1327 = vsyncadd [#allocation3], 4294966784 }
  0x3f   :  { %1328 = dma.done.wait [#allocation8], 1024  }
  0x40   :  { %1329 = vsyncadd [#allocation8], 4294966272 }
  0x41   :  { %69 = sfence }
  0x42   :  { %v74_v0 = vld [vmem:[#allocation7] sm:$0xff]  ;;  %v75_v1 = vld [vmem:[#allocation7 + $0x8] sm:$0xff]  ;;  %v76_v2 = vld [vmem:[#allocation7 + $0x10] sm:$0xff]  ;;  %vm78_vm0 = vcmask 261120   ;;  %vm182_vm1 = vcmask 523264   ;;  %s194_s3 = sld [smem:[#allocation2]] }
  0x43   :  { %v1114_v3 = vpack.c.bf16 %v75_v1, %v74_v0  ;;  %v77_v4 = vld [vmem:[#allocation7 + $0x18] sm:$0xff]  ;;  %v70_v5 = vld [vmem:[#allocation6] sm:$0xff]  ;;  %v71_v7 = vld [vmem:[#allocation6 + $0x8] sm:$0xff]  ;;  %s1338_s10 = smov 96   ;;  %s1339_s11 = smov 64   ;;  %vm241_vm2 = vcmask 130048  }
  0x44   :  { %v1118_v6 = vpack.c.bf16 %v77_v4, %v76_v2  ;;  %1044 = vmatprep.mubr.msk.f32.mxu0 %vm78_vm0, %v70_v5  ;;  %v72_v30 = vld [vmem:[#allocation6 + $0x10] sm:$0xff]  ;;  %v73_v31 = vld [vmem:[#allocation6 + $0x18] sm:$0xff]  ;;  %s979_s12 = sld [smem:[#allocation2 + $0x1]]  ;;  %vm1469_vm3 = vmpackc.low %vm78_vm0, %vm78_vm0  ;;  %s1340_s13 = smov [#allocation10]  }
  0x45   :  { %1115 = vmatprep.subr.bf16.mxu0 %v1114_v3  ;;  %s949_s14 = sshll.u32 %s1340_s13, 4  ;;  %s950_s14 = int_to_ptr.vmem [resolvable:$true] %s949_s14 }
  0x46   :  { %1117 = vmatpush3.bf16.msra.mxu0 %v1114_v3  ;;  %s1302_s2 = scalar_lea.vmem %s950_s14, 512  ;;  %p1307_p0 = scmp.lt.s32.totalorder %s950_s14, %s950_s14 }
  0x47   :  { %1119 = vmatprep.subr.bf16.mxu0 %v1118_v6  ;;  %p1303_p13 = scmp.ne.s32.totalorder %s950_s14, %s1302_s2  ;;  %p1308_p1 = scmp.lt.s32.totalorder %s1302_s2, %s1302_s2 }
  0x48   :  { %v195_v22 = vstv %s194_s3 }
  0x49   :  { %p1309_p2 = por %p1308_p1, %p1307_p0 }
  0x4a   :  { %1121 = vmatpush3.bf16.msra.mxu0 %v1118_v6  ;;  %v577_v59 = vstv %s979_s12 }
  0x4b   :  { %p1310_p3 = pnand %p1309_p2, %p1303_p13 }
  0x4d   :  { %1045 = vmatmul.mubr.msk.f32.vlgmr.msra.gmra.mrb[0].mxu0 %vm78_vm0, %v71_v7 }
  0x4e   :  { %1047 = vmatprep.mubr.msk.f32.mxu0 %vm78_vm0, %v72_v30  ;;  %v178_v30 = vld [vmem:[#allocation9 + $0x10] sm:$0xff] }
  0x51   :  { %1048 = vmatmul.mubr.msk.f32.gmra.mrb[2].mxu0 %vm78_vm0, %v73_v31 }
 0x120   :  { %v1425_v8 = vpop.f32.mrb[0].mxu0 }
 0x121   :  { %v181_v9 = vmul.f32 %v1425_v8, %v1425_v8  ;;  %v157_v10 = vpop.f32.mrb[1].mxu0 }
 0x122   :  { %v180_v11 = vmul.f32 %v157_v10, %v157_v10 }
 0x123   :  { %v184_v12 = vsel %vm182_vm1, %v181_v9, 0.0 }
 0x124   :  { %v183_v13 = vsel %vm182_vm1, %v180_v11, 0.0  ;;  %v1442_v41 = vpop.f32.mrb[2].mxu0 }
 0x125   :  { %v185_v14 = vadd.f32 %v184_v12, %v183_v13  ;;  %v564_v42 = vmul.f32 %v1442_v41, %v1442_v41  ;;  %v1446_v43 = vpop.f32.mrb[3].mxu0 }
 0x126   :  { %v563_v44 = vmul.f32 %v1446_v43, %v1446_v43 }
 0x127   :  { %v186_v15 = vrot.slane %v185_v14, 4  ;;  %v566_v45 = vsel %vm182_vm1, %v564_v42, 0.0 }
 0x128   :  { %v565_v46 = vsel %vm182_vm1, %v563_v44, 0.0 }
 0x129   :  { %v187_v16 = vadd.f32 %v186_v15, %v185_v14  ;;  %v567_v47 = vadd.f32 %v566_v45, %v565_v46 }
 0x12b   :  { %v188_v17 = vrot.slane %v187_v16, 2  ;;  %v568_v48 = vrot.slane %v567_v47, 4 }
 0x12d   :  { %v189_v18 = vadd.f32 %v188_v17, %v187_v16  ;;  %v569_v49 = vadd.f32 %v568_v48, %v567_v47 }
 0x12f   :  { %v190_v19 = vrot.slane %v189_v18, 1  ;;  %v570_v50 = vrot.slane %v569_v49, 2 }
 0x131   :  { %v191_v20 = vadd.f32 %v190_v19, %v189_v18  ;;  %v571_v51 = vadd.f32 %v570_v50, %v569_v49 }
 0x133   :  { %v192_v21 = vmax.f32 %v191_v20, 1e-24  ;;  %v572_v52 = vrot.slane %v571_v51, 1 }
 0x135   :  { %1190 = vrsqrt.f32 %v192_v21  ;;  %v573_v53 = vadd.f32 %v572_v52, %v571_v51 }
 0x137   :  { %v574_v54 = vmax.f32 %v573_v53, 1e-24 }
 0x139   :  { %1192 = vrsqrt.f32 %v574_v54 }
 0x13f   :  { %v1191_v23 = vpop.eup %1190 }
 0x140   :  { %v199_v24 = vmul.f32 %v1191_v23, %v157_v10  ;;  %v200_v25 = vmul.f32 %v1191_v23, %v1425_v8  ;;  %v196_v26 = vmul.f32 %v1191_v23, %v195_v22 }
 0x142   :  { %v1180_v27 = vpack.i.bf16 %v200_v25, %v199_v24  ;;  %v197_v28 = vmul.f32 %v196_v26, %v157_v10  ;;  %v198_v29 = vmul.f32 %v1425_v8, %v196_v26 }
 0x143   :  { %v1193_v55 = vpop.eup %1192 }
 0x144   :  { %1181 = vrot.lane.b32.xlu0 %v1180_v27, %s1338_s10  ;;  %v581_v56 = vmul.f32 %v1193_v55, %v1446_v43  ;;  %v582_v57 = vmul.f32 %v1193_v55, %v1442_v41  ;;  %v578_v60 = vmul.f32 %v1193_v55, %v577_v59 }
 0x146   :  { %v1185_v58 = vpack.i.bf16 %v582_v57, %v581_v56  ;;  %v579_v61 = vmul.f32 %v578_v60, %v1446_v43  ;;  %v580_v62 = vmul.f32 %v1442_v41, %v578_v60 }
 0x162   :  { %201 = vxpose.xlu0.b32.start [1/2] (short) (narrow) %v197_v28, 32  ;;  %v176_v28 = vld [vmem:[#allocation9] sm:$0xff] }
 0x166   :  { %202 = vxpose.xlu0.b32.end [2/2] (short) (narrow) %v198_v29, 32  ;;  %v177_v29 = vld [vmem:[#allocation9 + $0x8] sm:$0xff] }
 0x167   :  { %v1138_v31 = vpack.c.bf16 %v177_v29, %v176_v28 }
 0x169   :  { %1139 = vmatprep.subr.bf16.mxu0 %v1138_v31 }
 0x16a   :  { %1141 = vmatpush3.bf16.msra.mxu0 %v1138_v31 }
 0x197   :  { %385 = vrot.lane.b32.xlu0 %v157_v10, %s1339_s11 }
 0x1b6   :  { %v1182_v32 = vpop.permute.xlu0 %1181 }
 0x1b7   :  { %v1184_v33 = vunpack.i.h.bf16 %v1182_v32  ;;  %v1183_v34 = vunpack.i.l.bf16 %v1182_v32  ;;  %v179_v32 = vld [vmem:[#allocation9 + $0x18] sm:$0xff] }
 0x1b9   :  { %v1122_v35 = vpack.c.bf16 %v1184_v33, %v1183_v34  ;;  %v1142_v33 = vpack.c.bf16 %v179_v32, %v178_v30 }
 0x1bb   :  { %1123 = vmatprep.subr.bf16.mxu1 %v1122_v35  ;;  %1143 = vmatprep.subr.bf16.mxu0 %v1142_v33 }
 0x1bc   :  { %1125 = vmatpush3.bf16.msra.mxu1 %v1122_v35  ;;  %1145 = vmatpush3.bf16.msra.mxu0 %v1142_v33 }
 0x1e2   :  { %v217_v36 = vpop.trf.xlu0 }
 0x1e3   :  { %1054 = vmatprep.mubr.msk.f32.mxu1 %vm241_vm2, %v217_v36 }
 0x1e6   :  { %v218_v37 = vpop.trf.xlu0 }
 0x1e7   :  { %1055 = vmatmul.mubr.msk.f32.vlgmr.msra.gmra.mrb[0].mxu1 %vm241_vm2, %v218_v37 }
 0x1ea   :  { %v219_v38 = vpop.trf.xlu0 }
 0x1eb   :  { %1057 = vmatprep.mubr.msk.f32.mxu1 %vm241_vm2, %v219_v38 }
 0x1ee   :  { %v220_v39 = vpop.trf.xlu0 }
 0x1ef   :  { %1058 = vmatmul.mubr.msk.f32.gmra.mrb[2].mxu1 %vm241_vm2, %v220_v39 }
 0x209   :  { %v386_v40 = vpop.permute.xlu0 %385 }
 0x20a   :  { %1068 = vmatprep.mubr.msk.f32.mxu1 %vm78_vm0, %v386_v40 }
 0x2ba   :  { %v1056_v63 = vpop.f32.mrb[0].mxu1 }
 0x2bb   :  { %v320_v0 = vpop.f32.mrb[1].mxu1  ;;  %v342_v1 = vsel %vm78_vm0, %v1056_v63, -inf }
 0x2bc   :  { %343 = vmax.xlane.f32.xlu1 %v342_v1  ;;  %v339_v2 = vsel %vm78_vm0, %v320_v0, -inf }
 0x2c0   :  { %340 = vmax.xlane.f32.xlu1 %v339_v2 }
 0x2c2   :  { %v1059_v3 = vpop.f32.mrb[2].mxu1 }
 0x2c3   :  { %v330_v4 = vpop.f32.mrb[3].mxu1  ;;  %v348_v6 = vsel %vm78_vm0, %v1059_v3, -inf }
 0x2c4   :  { %v345_v5 = vsel %vm78_vm0, %v330_v4, -inf }
 0x2c5   :  { %346 = vmax.xlane.f32.xlu1 %v345_v5 }
 0x2c9   :  { %349 = vmax.xlane.f32.xlu1 %v348_v6 }
 0x2da   :  { %1186 = vrot.lane.b32.xlu1 %v1185_v58, %s1338_s10 }
 0x349   :  { %v344_v7 = vpop.xlane.xlu1 %343 }
 0x34a   :  { %v352_v9 = vsub.f32 %v1056_v63, %v344_v7 }
 0x34c   :  { %v357_v10 = vmul.f32 1.442695, %v352_v9 }
 0x34d   :  { %v341_v11 = vpop.xlane.xlu1 %340 }
 0x34e   :  { %1194 = vpow2.f32 %v357_v10  ;;  %v351_v12 = vsub.f32 %v320_v0, %v341_v11 }
 0x350   :  { %v355_v13 = vmul.f32 1.442695, %v351_v12 }
 0x352   :  { %1196 = vpow2.f32 %v355_v13  ;;  %v347_v14 = vpop.xlane.xlu1 %346 }
 0x353   :  { %v353_v15 = vsub.f32 %v330_v4, %v347_v14 }
 0x355   :  { %v359_v19 = vmul.f32 1.442695, %v353_v15 }
 0x356   :  { %v350_v16 = vpop.xlane.xlu1 %349 }
 0x357   :  { %v354_v17 = vsub.f32 %v1059_v3, %v350_v16 }
 0x358   :  { %v1195_v18 = vpop.eup %1194 }
 0x359   :  { %v361_v20 = vmul.f32 1.442695, %v354_v17  ;;  %v366_v21 = vsel %vm78_vm0, %v1195_v18, 0.0 }
 0x35a   :  { %367 = vadd.xlane.f32.xlu1 %v366_v21  ;;  %v1187_v34 = vpop.permute.xlu1 %1186 }
 0x35b   :  { %1198 = vpow2.f32 %v361_v20  ;;  %v1189_v48 = vunpack.i.h.bf16 %v1187_v34  ;;  %v1188_v49 = vunpack.i.l.bf16 %v1187_v34 }
 0x35c   :  { %v1197_v22 = vpop.eup %1196  ;;  %1200 = vpow2.f32 %v359_v19 }
 0x35d   :  { %v363_v23 = vsel %vm78_vm0, %v1197_v22, 0.0  ;;  %v1146_v53 = vpack.c.bf16 %v1189_v48, %v1188_v49 }
 0x35e   :  { %364 = vadd.xlane.f32.xlu1 %v363_v23 }
 0x365   :  { %v1199_v24 = vpop.eup %1198 }
 0x366   :  { %v372_v25 = vsel %vm78_vm0, %v1199_v24, 0.0  ;;  %v1201_v26 = vpop.eup %1200 }
 0x367   :  { %373 = vadd.xlane.f32.xlu1 %v372_v25  ;;  %v369_v27 = vsel %vm78_vm0, %v1201_v26, 0.0 }
 0x36b   :  { %370 = vadd.xlane.f32.xlu1 %v369_v27 }
 0x37c   :  { %387 = vrot.lane.b32.xlu1 %v1425_v8, %s1339_s11 }
 0x3a5   :  { %583 = vxpose.xlu1.b32.start [1/2] (short) (narrow) %v579_v61, 32 }
 0x3a9   :  { %584 = vxpose.xlu1.b32.end [2/2] (short) (narrow) %v580_v62, 32 }
 0x3e7   :  { %v368_v35 = vpop.xlane.xlu1 %367 }
 0x3e8   :  { %1202 = vrcp.f32 %v368_v35 }
 0x3eb   :  { %v365_v36 = vpop.xlane.xlu1 %364 }
 0x3ec   :  { %1204 = vrcp.f32 %v365_v36 }
 0x3f2   :  { %v1203_v37 = vpop.eup %1202 }
 0x3f3   :  { %v378_v40 = vmul.f32 %v1203_v37, %v1195_v18 }
 0x3f4   :  { %v374_v38 = vpop.xlane.xlu1 %373 }
 0x3f5   :  { %1206 = vrcp.f32 %v374_v38 }
 0x3f6   :  { %v1205_v8 = vpop.eup %1204 }
 0x3f7   :  { %v376_v39 = vmul.f32 %v1205_v8, %v1197_v22 }
 0x3f8   :  { %v371_v42 = vpop.xlane.xlu1 %370 }
 0x3f9   :  { %1208 = vrcp.f32 %v371_v42  ;;  %v1126_v45 = vpack.c.bf16 %v378_v40, %v376_v39 }
 0x3fb   :  { %1128 = vmatprep.subr.msk.bf16.mxu1 %vm1469_vm3, %v1126_v45 }
 0x3fc   :  { %1131 = vmatpush3.bf16.xpose.msk.msra.mxu1 %vm1469_vm3, %v1126_v45  ;;  %v388_v54 = vpop.permute.xlu1 %387 }
 0x3ff   :  { %v1207_v46 = vpop.eup %1206 }
 0x400   :  { %v382_v51 = vmul.f32 %v1207_v46, %v1199_v24 }
 0x403   :  { %v1209_v47 = vpop.eup %1208 }
 0x404   :  { %v380_v50 = vmul.f32 %v1209_v47, %v1201_v26 }
 0x406   :  { %v1132_v52 = vpack.c.bf16 %v382_v51, %v380_v50 }
 0x408   :  { %1134 = vmatprep.subr.msk.bf16.mxu1 %vm1469_vm3, %v1132_v52 }
 0x409   :  { %1137 = vmatpush3.bf16.xpose.msk.msra.mxu1 %vm1469_vm3, %v1132_v52 }
 0x40a   :  { %1147 = vmatprep.subr.bf16.mxu1 %v1146_v53 }
 0x410   :  { %1069 = vmatmul.mubr.msk.f32.vlgmr.msra.gmra.mrb[4].mxu1 %vm78_vm0, %v388_v54 }
 0x411   :  { %1149 = vmatpush3.bf16.msra.mxu1 %v1146_v53 }
 0x412   :  { %1163 = vmatprep.subr.bf16.mxu1 %v1138_v31 }
 0x425   :  { %v599_v55 = vpop.trf.xlu1 }
 0x426   :  { %1086 = vmatprep.mubr.msk.f32.mxu1 %vm241_vm2, %v599_v55 }
 0x429   :  { %v600_v56 = vpop.trf.xlu1 }
 0x42a   :  { %1087 = vmatmul.mubr.msk.f32.vlgmr.msra.gmra.mrb[6].mxu1 %vm241_vm2, %v600_v56 }
 0x42b   :  { %1165 = vmatpush3.bf16.msra.mxu1 %v1138_v31 }
 0x42c   :  { %1167 = vmatprep.subr.bf16.mxu1 %v1142_v33 }
 0x42d   :  { %v601_v57 = vpop.trf.xlu1 }
 0x42e   :  { %1089 = vmatprep.mubr.msk.f32.mxu1 %vm241_vm2, %v601_v57 }
 0x42f   :  { %1169 = vmatpush3.bf16.msra.mxu1 %v1142_v33 }
 0x431   :  { %v602_v58 = vpop.trf.xlu1 }
 0x432   :  { %1090 = vmatmul.mubr.msk.f32.gmra.mrb[8].mxu1 %vm241_vm2, %v602_v58 }
 0x4e3   :  { %v1070_v59 = vpop.f32.mrb[4].mxu1 }
 0x4e4   :  { %v471_v60 = vpop.f32.mrb[5].mxu1 }
 0x4e5   :  { %1079 = vmatprep.mubr.msk.f32.mxu0 %vm78_vm0, %v471_v60 }
 0x4e6   :  { %1080 = vmatmul.mubr.msk.f32.vlgmr.msra.gmra.mrb[4].mxu0 %vm78_vm0, %v1070_v59 }
 0x4fd   :  { %v1088_v61 = vpop.f32.mrb[6].mxu1 }
 0x4fe   :  { %v701_v62 = vpop.f32.mrb[7].mxu1  ;;  %v723_v63 = vsel %vm78_vm0, %v1088_v61, -inf }
 0x4ff   :  { %724 = vmax.xlane.f32.xlu1 %v723_v63  ;;  %v720_v0 = vsel %vm78_vm0, %v701_v62, -inf }
 0x500   :  { %721 = vmax.xlane.f32.xlu0 %v720_v0 }
 0x505   :  { %v1091_v1 = vpop.f32.mrb[8].mxu1 }
 0x506   :  { %v711_v2 = vpop.f32.mrb[9].mxu1  ;;  %v729_v4 = vsel %vm78_vm0, %v1091_v1, -inf }
 0x507   :  { %v726_v3 = vsel %vm78_vm0, %v711_v2, -inf }
 0x508   :  { %727 = vmax.xlane.f32.xlu0 %v726_v3 }
 0x50c   :  { %730 = vmax.xlane.f32.xlu0 %v729_v4 }
 0x510   :  { %768 = vrot.lane.b32.xlu1 %v1442_v41, %s1339_s11 }
 0x58c   :  { %v725_v5 = vpop.xlane.xlu1 %724 }
 0x58d   :  { %v733_v6 = vsub.f32 %v1088_v61, %v725_v5  ;;  %v722_v7 = vpop.xlane.xlu0 %721 }
 0x58e   :  { %v732_v9 = vsub.f32 %v701_v62, %v722_v7 }
 0x58f   :  { %v738_v10 = vmul.f32 1.442695, %v733_v6 }
 0x590   :  { %v736_v11 = vmul.f32 1.442695, %v732_v9  ;;  %v769_v40 = vpop.permute.xlu1 %768 }
 0x591   :  { %1210 = vpow2.f32 %v738_v10 }
 0x592   :  { %1212 = vpow2.f32 %v736_v11 }
 0x595   :  { %v728_v12 = vpop.xlane.xlu0 %727 }
 0x596   :  { %v734_v13 = vsub.f32 %v711_v2, %v728_v12 }
 0x598   :  { %v740_v14 = vmul.f32 1.442695, %v734_v13 }
 0x599   :  { %v731_v15 = vpop.xlane.xlu0 %730 }
 0x59a   :  { %1214 = vpow2.f32 %v740_v14  ;;  %v735_v16 = vsub.f32 %v1091_v1, %v731_v15 }
 0x59b   :  { %v1211_v17 = vpop.eup %1210 }
 0x59c   :  { %v742_v18 = vmul.f32 1.442695, %v735_v16  ;;  %v747_v19 = vsel %vm78_vm0, %v1211_v17, 0.0  ;;  %v1213_v20 = vpop.eup %1212 }
 0x59d   :  { %748 = vadd.xlane.f32.xlu0 %v747_v19  ;;  %v744_v41 = vsel %vm78_vm0, %v1213_v20, 0.0 }
 0x59e   :  { %1216 = vpow2.f32 %v742_v18 }
 0x5a1   :  { %745 = vadd.xlane.f32.xlu0 %v744_v41 }
 0x5a4   :  { %v1215_v21 = vpop.eup %1214 }
 0x5a5   :  { %v750_v22 = vsel %vm78_vm0, %v1215_v21, 0.0 }
 0x5a6   :  { %751 = vadd.xlane.f32.xlu0 %v750_v22 }
 0x5a8   :  { %v1217_v23 = vpop.eup %1216 }
 0x5a9   :  { %v753_v24 = vsel %vm78_vm0, %v1217_v23, 0.0 }
 0x5aa   :  { %754 = vadd.xlane.f32.xlu0 %v753_v24 }
 0x5b9   :  { %v1081_v25 = vpop.f32.mrb[4].mxu0 }
 0x5ba   :  { %562 = vst.msk [vmem:[#allocation10 + $0x8] sm:$0xff] %vm78_vm0, %v1081_v25  ;;  %v552_v26 = vpop.f32.mrb[5].mxu0 }
 0x5bb   :  { %561 = vst.msk [vmem:[#allocation10] sm:$0xff] %vm78_vm0, %v552_v26 }
 0x5c0   :  { %766 = vrot.lane.b32.xlu0 %v1446_v43, %s1339_s11 }
 0x62a   :  { %v749_v27 = vpop.xlane.xlu0 %748 }
 0x62b   :  { %1218 = vrcp.f32 %v749_v27 }
 0x62e   :  { %v746_v28 = vpop.xlane.xlu0 %745 }
 0x62f   :  { %1220 = vrcp.f32 %v746_v28 }
 0x633   :  { %v752_v29 = vpop.xlane.xlu0 %751 }
 0x634   :  { %1222 = vrcp.f32 %v752_v29 }
 0x635   :  { %v1219_v30 = vpop.eup %1218 }
 0x636   :  { %v759_v34 = vmul.f32 %v1219_v30, %v1211_v17 }
 0x637   :  { %v755_v31 = vpop.xlane.xlu0 %754 }
 0x638   :  { %1224 = vrcp.f32 %v755_v31 }
 0x639   :  { %v1221_v32 = vpop.eup %1220 }
 0x63a   :  { %v757_v33 = vmul.f32 %v1221_v32, %v1213_v20 }
 0x63b   :  { %v767_v35 = vpop.permute.xlu0 %766 }
 0x63c   :  { %1100 = vmatprep.mubr.msk.f32.mxu0 %vm78_vm0, %v767_v35  ;;  %v1150_v36 = vpack.c.bf16 %v759_v34, %v757_v33 }
 0x63e   :  { %1152 = vmatprep.subr.msk.bf16.mxu0 %vm1469_vm3, %v1150_v36  ;;  %v1223_v43 = vpop.eup %1222 }
 0x63f   :  { %1155 = vmatpush3.bf16.xpose.msk.msra.mxu0 %vm1469_vm3, %v1150_v36  ;;  %v761_v38 = vmul.f32 %v1223_v43, %v1215_v21 }
 0x642   :  { %v1225_v37 = vpop.eup %1224 }
 0x643   :  { %v763_v8 = vmul.f32 %v1225_v37, %v1217_v23 }
 0x645   :  { %v1156_v39 = vpack.c.bf16 %v763_v8, %v761_v38 }
 0x647   :  { %1158 = vmatprep.subr.msk.bf16.mxu0 %vm1469_vm3, %v1156_v39 }
 0x648   :  { %1161 = vmatpush3.bf16.xpose.msk.msra.mxu0 %vm1469_vm3, %v1156_v39 }
 0x64f   :  { %1101 = vmatmul.mubr.msk.f32.vlgmr.msra.gmra.mrb[6].mxu0 %vm78_vm0, %v769_v40 }
 0x722   :  { %v1102_v42 = vpop.f32.mrb[6].mxu0 }
 0x723   :  { %v852_v45 = vpop.f32.mrb[7].mxu0 }
 0x724   :  { %1111 = vmatprep.mubr.msk.f32.mxu1 %vm78_vm0, %v852_v45 }
 0x725   :  { %1112 = vmatmul.mubr.msk.f32.vlgmr.msra.gmra.mrb[10].mxu1 %vm78_vm0, %v1102_v42 }
 0x7f8   :  { %v1113_v46 = vpop.f32.mrb[10].mxu1 }
 0x7f9   :  { %943 = vst.msk [vmem:[#allocation10 + $0x18] sm:$0xff] %vm78_vm0, %v1113_v46  ;;  %v933_v47 = vpop.f32.mrb[11].mxu1 }
 0x7fa   :  { %942 = vst.msk [vmem:[#allocation10 + $0x10] sm:$0xff] %vm78_vm0, %v933_v47 }
 0x7fb   :  { %1313 = shalt.err (!%p1310_p3)
}
 0x7fc   :  { %s1314_s17 = scalar_lea.hbm %s1535_s4, 512 }
 0x7fd   :  { %p1315_p4 = scmp.ne.s32.totalorder %s1535_s4, %s1314_s17  ;;  %p1318_p5 = scmp.lt.u32.totalorder %s1314_s17, %s1535_s4 }
 0x7ff   :  { %p1320_p6 = pnand %p1318_p5, %p1315_p4 }
 0x801   :  { %1323 = shalt.err (!%p1320_p6)
}
 0x802   :  { %955 = dma.vmem_to_hbm [thread:$0]  %s950_s14, 512, %s1535_s4, [#allocation4], %s1334_s27, %s1334_s27, %s1335_s28  }
 0x803   :  { %1330 = dma.done.wait [#allocation4], 512  }
 0x804   :  { %1331 = vsyncadd [#allocation4], 4294966784 }
 0x805   :  { %959 = vsyncpa [#allocation3], 1 }
 0x806   :  { %960 = vsyncpa [#allocation8], 1 }
 0x807   :  { %961 = vsyncpa [#allocation4], 1 }
 0x808   :  { %962 = vsyncpa [#allocation5], 1 }

</bundles_post_ra>
